<compile_context>
chip_gen: v7x
topology: tpu7x:2x2x1
jax: 0.10.0
libtpu: 0.0.40
codegen_flags: <defaults>
</compile_context>

<pallas_src>
import functools
import math

import jax
import jax.numpy as jnp
from jax.experimental import pallas as pl
from jax.experimental.pallas import tpu as pltpu

# MXU operand dtype: bf16 in / f32 accumulate is fast on v5e/v6e/v7x MXUs.
_MXU_DTYPE = jnp.bfloat16


# ---------------------------------------------------------------------------
# Tiling helpers
# ---------------------------------------------------------------------------
def _row_tile(m, target=256):
    """Largest row tile <= target that divides m (full m if m is small)."""
    if m <= target:
        return m
    for t in (256, 128, 64, 32, 16, 8):
        if m % t == 0:
            return t
    return m


def _seq_tile(s, target=128):
    if s <= target:
        return s
    for t in (128, 64, 32, 16, 8):
        if s % t == 0:
            return t
    return s


def _heads_per_block(num_heads, head_dim, target_lanes=128):
    """Pack as many heads per flash grid step as fit ~128 lanes of per-head width."""
    best = 1
    for cand in range(1, num_heads + 1):
        if num_heads % cand == 0 and cand * head_dim <= target_lanes:
            best = cand
    return best


# ---------------------------------------------------------------------------
# Linear kernel:  y = x @ W.T + b  [+ residual]  [+ ReLU]
# ---------------------------------------------------------------------------
def _linear_kernel(x_ref, w_ref, b_ref, o_ref, *, activation):
    y = jnp.dot(x_ref[...].astype(_MXU_DTYPE), w_ref[...].astype(_MXU_DTYPE),
                preferred_element_type=jnp.float32)
    y = y + b_ref[...].astype(jnp.float32)
    if activation == "relu":
        y = jnp.maximum(y, 0.0)
    o_ref[...] = y.astype(o_ref.dtype)


def _linear_residual_kernel(x_ref, w_ref, b_ref, r_ref, o_ref, *, activation):
    y = jnp.dot(x_ref[...].astype(_MXU_DTYPE), w_ref[...].astype(_MXU_DTYPE),
                preferred_element_type=jnp.float32)
    y = y + b_ref[...].astype(jnp.float32)
    if activation == "relu":
        y = jnp.maximum(y, 0.0)
    y = y + r_ref[...].astype(jnp.float32)
    o_ref[...] = y.astype(o_ref.dtype)


def linear(x, w, b, *, activation=None, residual=None):
    """x: (M, K); w: (N, K) (PyTorch layout); b: (N,).  Returns x @ w.T + b, shape (M, N).

    Weight is pre-transposed on the host (free layout plumbing) and kept resident in VMEM
    (constant index_map) while the activation rows are streamed as "parallel" tiles.
    """
    M, K = x.shape
    N, K2 = w.shape
    assert K == K2
    wt = w.T                         # (K, N) once, on the host — no in-kernel transpose
    b2 = b.reshape(1, N)
    tm = _row_tile(M)
    grid = (M // tm,)

    in_specs = [
        pl.BlockSpec((tm, K), lambda i: (i, 0)),   # activations: streamed per row tile
        pl.BlockSpec((K, N), lambda i: (0, 0)),    # weight: resident across all tiles
        pl.BlockSpec((1, N), lambda i: (0, 0)),    # bias: resident
    ]
    args = [x, wt, b2]
    if residual is not None:
        in_specs.append(pl.BlockSpec((tm, N), lambda i: (i, 0)))
        args.append(residual)
        kernel = functools.partial(_linear_residual_kernel, activation=activation)
    else:
        kernel = functools.partial(_linear_kernel, activation=activation)

    return pl.pallas_call(
        kernel,
        out_shape=jax.ShapeDtypeStruct((M, N), x.dtype),
        grid_spec=pltpu.PrefetchScalarGridSpec(
            num_scalar_prefetch=0,
            grid=grid,
            in_specs=in_specs,
            out_specs=pl.BlockSpec((tm, N), lambda i: (i, 0)),
        ),
        compiler_params=pltpu.CompilerParams(dimension_semantics=("parallel",)),
    )(*args)


# ---------------------------------------------------------------------------
# LayerNorm kernel (normalizes last dim, eps = 1e-5 like nn.LayerNorm)
# ---------------------------------------------------------------------------
def _layer_norm_kernel(x_ref, g_ref, b_ref, o_ref, *, eps):
    x = x_ref[...].astype(jnp.float32)
    mu = jnp.mean(x, axis=-1, keepdims=True)
    xc = x - mu
    var = jnp.mean(xc * xc, axis=-1, keepdims=True)
    inv = jax.lax.rsqrt(var + eps)                       # EUP rsqrt, no VALU divide
    y = xc * inv * g_ref[...].astype(jnp.float32) + b_ref[...].astype(jnp.float32)
    o_ref[...] = y.astype(o_ref.dtype)


def layer_norm(x, gamma, beta, eps=1e-5):
    """x: (M, E); gamma/beta: (E,)."""
    M, E = x.shape
    tm = _row_tile(M)
    return pl.pallas_call(
        functools.partial(_layer_norm_kernel, eps=eps),
        out_shape=jax.ShapeDtypeStruct((M, E), x.dtype),
        grid_spec=pltpu.PrefetchScalarGridSpec(
            num_scalar_prefetch=0,
            grid=(M // tm,),
            in_specs=[pl.BlockSpec((tm, E), lambda i: (i, 0)),
                      pl.BlockSpec((1, E), lambda i: (0, 0)),
                      pl.BlockSpec((1, E), lambda i: (0, 0))],
            out_specs=pl.BlockSpec((tm, E), lambda i: (i, 0)),
        ),
        compiler_params=pltpu.CompilerParams(dimension_semantics=("parallel",)),
    )(x, gamma.reshape(1, E), beta.reshape(1, E))


# ---------------------------------------------------------------------------
# Flash-attention kernel (online softmax, head-block packed, KV streamed)
# ---------------------------------------------------------------------------
def _flash_attn_kernel(q_ref, k_ref, v_ref, o_ref, m_sc, l_sc, acc_sc, *, sm_scale):
    ki = pl.program_id(2)

    @pl.when(ki == 0)
    def _():
        m_sc[...] = jnp.full(m_sc.shape, -jnp.inf, jnp.float32)
        l_sc[...] = jnp.zeros(l_sc.shape, jnp.float32)
        acc_sc[...] = jnp.zeros(acc_sc.shape, jnp.float32)

    q = (q_ref[0].astype(jnp.float32) * sm_scale).astype(_MXU_DTYPE)   # (hpb, tq, hd)
    k = k_ref[0].astype(_MXU_DTYPE)                                    # (hpb, tk, hd)
    v = v_ref[0].astype(_MXU_DTYPE)                                    # (hpb, tk, hd)

    # Batched over the packed head block; f32 accumulation on the MXU.
    s = jnp.einsum("hqd,hkd->hqk", q, k, preferred_element_type=jnp.float32)

    m_prev = m_sc[...]
    m_new = jnp.maximum(m_prev, jnp.max(s, axis=-1, keepdims=True))
    alpha = jnp.exp(m_prev - m_new)
    p = jnp.exp(s - m_new)
    l_sc[...] = alpha * l_sc[...] + jnp.sum(p, axis=-1, keepdims=True)
    acc_sc[...] = alpha * acc_sc[...] + jnp.einsum(
        "hqk,hkd->hqd", p.astype(_MXU_DTYPE), v, preferred_element_type=jnp.float32)
    m_sc[...] = m_new

    @pl.when(ki == pl.num_programs(2) - 1)
    def _():
        inv_l = pl.reciprocal(l_sc[...], approx=True)                  # EUP, not a divide
        o_ref[0] = (acc_sc[...] * inv_l).astype(o_ref.dtype)


def flash_attention(q, k, v, *, sm_scale):
    """q/k/v: (G, hpb, S, hd) -> (G, hpb, S, hd); no (S, S) scores ever materialized."""
    G, hpb, S, hd = q.shape
    tq = _seq_tile(S)
    tk = _seq_tile(S)
    grid = (G, S // tq, S // tk)

    def q_map(g, qi, ki):
        return (g, 0, qi, 0)

    def kv_map(g, qi, ki):
        return (g, 0, ki, 0)

    return pl.pallas_call(
        functools.partial(_flash_attn_kernel, sm_scale=sm_scale),
        out_shape=jax.ShapeDtypeStruct((G, hpb, S, hd), q.dtype),
        grid_spec=pltpu.PrefetchScalarGridSpec(
            num_scalar_prefetch=0,
            grid=grid,
            in_specs=[pl.BlockSpec((1, hpb, tq, hd), q_map),
                      pl.BlockSpec((1, hpb, tk, hd), kv_map),
                      pl.BlockSpec((1, hpb, tk, hd), kv_map)],
            out_specs=pl.BlockSpec((1, hpb, tq, hd), q_map),
            scratch_shapes=[pltpu.VMEM((hpb, tq, 1), jnp.float32),    # running max
                            pltpu.VMEM((hpb, tq, 1), jnp.float32),    # running sum
                            pltpu.VMEM((hpb, tq, hd), jnp.float32)],  # output accumulator
        ),
        compiler_params=pltpu.CompilerParams(
            dimension_semantics=("parallel", "parallel", "arbitrary")),
    )(q, k, v)


# ---------------------------------------------------------------------------
# MultiHeadAttention block (packed qkv_proj + out_proj, PyTorch semantics)
# ---------------------------------------------------------------------------
def multi_head_attention(x, qkv_w, qkv_b, out_w, out_b, *, num_heads, residual=None):
    B, S, E = x.shape
    H = num_heads
    assert E % H == 0
    hd = E // H

    # 1) One MXU-wide QKV projection: (B*S, E) @ (E, 3E).
    qkv = linear(x.reshape(B * S, E), qkv_w, qkv_b)                    # (B*S, 3E)

    # 2) Head split exactly like the PyTorch reshape/transpose/chunk:
    #    qkv_proj columns are laid out [head0: q|k|v, head1: q|k|v, ...].
    qkv = qkv.reshape(B, S, H, 3, hd)
    q = jnp.transpose(qkv[:, :, :, 0, :], (0, 2, 1, 3))                # (B, H, S, hd)
    k = jnp.transpose(qkv[:, :, :, 1, :], (0, 2, 1, 3))
    v = jnp.transpose(qkv[:, :, :, 2, :], (0, 2, 1, 3))

    # 3) Pack heads into blocks so every flash grid step carries ~128 lanes of work.
    hpb = _heads_per_block(H, hd)
    G = B * (H // hpb)
    o = flash_attention(q.reshape(G, hpb, S, hd),
                        k.reshape(G, hpb, S, hd),
                        v.reshape(G, hpb, S, hd),
                        sm_scale=1.0 / math.sqrt(hd))                  # (G, hpb, S, hd)

    # 4) Merge heads; output projection with the residual add fused into the epilogue.
    o = o.reshape(B, H, S, hd).transpose(0, 2, 1, 3).reshape(B * S, E)
    res2d = None if residual is None else residual.reshape(B * S, E)
    y = linear(o, out_w, out_b, residual=res2d)
    return y.reshape(B, S, E)


# ---------------------------------------------------------------------------
# Sequence mean-pool kernel (B, S, E) -> (B, E)
# ---------------------------------------------------------------------------
def _mean_pool_kernel(x_ref, o_ref):
    o_ref[...] = jnp.mean(x_ref[...].astype(jnp.float32), axis=1).astype(o_ref.dtype)


def mean_pool(x):
    B, S, E = x.shape
    return pl.pallas_call(
        _mean_pool_kernel,
        out_shape=jax.ShapeDtypeStruct((B, E), x.dtype),
        grid_spec=pltpu.PrefetchScalarGridSpec(
            num_scalar_prefetch=0,
            grid=(1,),
            in_specs=[pl.BlockSpec((B, S, E), lambda i: (0, 0, 0))],
            out_specs=pl.BlockSpec((B, E), lambda i: (0, 0)),
        ),
    )(x)


# ---------------------------------------------------------------------------
# TransformerEncoderLayer / TransformerEncoder / TransformerModel forward
# ---------------------------------------------------------------------------
def encoder_layer(x, p):
    B, S, E = x.shape
    # Self-attention sub-block:  x = attn(norm1(x)) + x      (dropout = identity at eval)
    h = layer_norm(x.reshape(B * S, E), p["ln1_g"], p["ln1_b"]).reshape(B, S, E)
    x = multi_head_attention(h, p["qkv_w"], p["qkv_b"],
                             p["attn_out_w"], p["attn_out_b"],
                             num_heads=p["num_heads"], residual=x)
    # TODO(synk): nn.Dropout is identity in eval mode; training-mode dropout not implemented.
    # Feed-forward sub-block:   x = ff2(relu(ff1(norm2(x)))) + x
    h = layer_norm(x.reshape(B * S, E), p["ln2_g"], p["ln2_b"])
    h = linear(h, p["ff1_w"], p["ff1_b"], activation="relu")
    x = linear(h, p["ff2_w"], p["ff2_b"], residual=x.reshape(B * S, E)).reshape(B, S, E)
    return x


def transformer_model(x, params):
    B, S, Din = x.shape
    E = params["embed_dim"]
    h = linear(x.reshape(B * S, Din), params["emb_w"], params["emb_b"]).reshape(B, S, E)
    for lp in params["layers"]:
        h = encoder_layer(h, lp)
    h = layer_norm(h.reshape(B * S, E), params["lnf_g"], params["lnf_b"]).reshape(B, S, E)
    pooled = mean_pool(h)                                              # (B, E)
    return linear(pooled, params["out_w"], params["out_b"])            # (B, output_dim)


# ---------------------------------------------------------------------------
# Parameter construction (PyTorch nn.Linear / nn.LayerNorm default init)
# ---------------------------------------------------------------------------
def _init_linear(key, in_f, out_f):
    k1, k2 = jax.random.split(key)
    bound = 1.0 / math.sqrt(in_f)
    w = jax.random.uniform(k1, (out_f, in_f), jnp.float32, -bound, bound)
    b = jax.random.uniform(k2, (out_f,), jnp.float32, -bound, bound)
    return w, b


def make_params(key, input_dim, output_dim, embed_dim, num_layers, num_heads, ff_dim):
    keys = jax.random.split(key, 2 + num_layers)
    emb_w, emb_b = _init_linear(keys[0], input_dim, embed_dim)
    out_w, out_b = _init_linear(keys[1], embed_dim, output_dim)
    ones = jnp.ones((embed_dim,), jnp.float32)
    zeros = jnp.zeros((embed_dim,), jnp.float32)
    layers = []
    for li in range(num_layers):
        lk = jax.random.split(keys[2 + li], 4)
        qkv_w, qkv_b = _init_linear(lk[0], embed_dim, 3 * embed_dim)
        ao_w, ao_b = _init_linear(lk[1], embed_dim, embed_dim)
        ff1_w, ff1_b = _init_linear(lk[2], embed_dim, ff_dim)
        ff2_w, ff2_b = _init_linear(lk[3], ff_dim, embed_dim)
        layers.append(dict(num_heads=num_heads,
                           qkv_w=qkv_w, qkv_b=qkv_b,
                           attn_out_w=ao_w, attn_out_b=ao_b,
                           ff1_w=ff1_w, ff1_b=ff1_b,
                           ff2_w=ff2_w, ff2_b=ff2_b,
                           ln1_g=ones, ln1_b=zeros,
                           ln2_g=ones, ln2_b=zeros))
    return dict(embed_dim=embed_dim, emb_w=emb_w, emb_b=emb_b,
                out_w=out_w, out_b=out_b, lnf_g=ones, lnf_b=zeros, layers=layers)


# ---------------------------------------------------------------------------
# Pure-JAX reference (mirrors the PyTorch forward) for verification
# ---------------------------------------------------------------------------
def reference_forward(x, params):
    def ln(x, g, b, eps=1e-5):
        mu = x.mean(-1, keepdims=True)
        var = ((x - mu) ** 2).mean(-1, keepdims=True)
        return (x - mu) / jnp.sqrt(var + eps) * g + b

    def mha(x, qkv_w, qkv_b, out_w, out_b, H):
        B, S, E = x.shape
        hd = E // H
        qkv = (x @ qkv_w.T + qkv_b).reshape(B, S, H, 3 * hd).transpose(0, 2, 1, 3)
        q, k, v = qkv[..., :hd], qkv[..., hd:2 * hd], qkv[..., 2 * hd:]
        q = q / math.sqrt(hd)
        a = jax.nn.softmax(q @ jnp.swapaxes(k, -1, -2), axis=-1)
        o = (a @ v).transpose(0, 2, 1, 3).reshape(B, S, E)
        return o @ out_w.T + out_b

    h = x @ params["emb_w"].T + params["emb_b"]
    for lp in params["layers"]:
        r = h
        t = ln(h, lp["ln1_g"], lp["ln1_b"])
        h = mha(t, lp["qkv_w"], lp["qkv_b"], lp["attn_out_w"], lp["attn_out_b"],
                lp["num_heads"]) + r
        r = h
        t = ln(h, lp["ln2_g"], lp["ln2_b"])
        t = jnp.maximum(t @ lp["ff1_w"].T + lp["ff1_b"], 0.0) @ lp["ff2_w"].T + lp["ff2_b"]
        h = t + r
    h = ln(h, params["lnf_g"], params["lnf_b"])
    return h.mean(axis=1) @ params["out_w"].T + params["out_b"]


if __name__ == "__main__":
    B, S = 2, 8
    input_dim, output_dim = 16, 8
    embed_dim, num_layers, num_heads, ff_dim = 32, 2, 4, 64

    key = jax.random.PRNGKey(0)
    kx, kp = jax.random.split(key)
    x = jax.random.normal(kx, (B, S, input_dim), dtype=jnp.float32)
    params = make_params(kp, input_dim, output_dim, embed_dim, num_layers,
                         num_heads, ff_dim)

    y = transformer_model(x, params)
    y = jax.block_until_ready(y)

    y_ref = reference_forward(x, params)
    max_err = float(jnp.max(jnp.abs(y - y_ref)))
    # Loose tolerance: matmuls use bf16 MXU operands with f32 accumulation.
    assert jnp.allclose(y, y_ref, atol=5e-2, rtol=5e-2), \
        f"mismatch vs reference (max abs err {max_err})"

    print("KERNEL_OK")
</pallas_src>

<mosaic_0001>
module attributes {stable_mosaic.version = 11 : i64} {
  func.func @_linear_kernel(%arg0: i32, %arg1: memref<16x16xf32, #tpu.memory_space<vmem>>, %arg2: memref<16x32xf32, #tpu.memory_space<vmem>>, %arg3: memref<1x32xf32, #tpu.memory_space<vmem>>, %arg4: memref<16x32xf32, #tpu.memory_space<vmem>>) attributes {dimension_semantics = [#tpu.dimension_semantics<parallel>], iteration_bounds = array<i64: 1>, scalar_prefetch = 0 : i64, scratch_operands = 0 : i64, tpu.core_type = #tpu.core_type<tc>, window_params = [{transform_indices = @transform_0, window_bounds = array<i64: 16, 16>}, {pipeline_mode = #tpu.pipeline_mode<synchronous>, transform_indices = @transform_1, window_bounds = array<i64: 16, 32>}, {pipeline_mode = #tpu.pipeline_mode<synchronous>, transform_indices = @transform_2, window_bounds = array<i64: 1, 32>}, {transform_indices = @transform_3, window_bounds = array<i64: 16, 32>}]} {
    %c0 = arith.constant 0 : index
    %c0_0 = arith.constant 0 : index
    %0 = vector.load %arg1[%c0, %c0_0] : memref<16x16xf32, #tpu.memory_space<vmem>>, vector<16x16xf32>
    %1 = arith.truncf %0 : vector<16x16xf32> to vector<16x16xbf16>
    %c0_1 = arith.constant 0 : index
    %c0_2 = arith.constant 0 : index
    %2 = vector.load %arg2[%c0_1, %c0_2] : memref<16x32xf32, #tpu.memory_space<vmem>>, vector<16x32xf32>
    %3 = arith.truncf %2 : vector<16x32xf32> to vector<16x32xbf16>
    %cst = arith.constant dense<0.000000e+00> : vector<16x32xf32>
    %4 = tpu.matmul %1, %3, %cst {dimension_numbers = #tpu.dot_dimension_numbers<[1], [0], [0], [1], [0, 0, 1, 1], [], []>} : vector<16x16xbf16>, vector<16x32xbf16>, vector<16x32xf32> -> vector<16x32xf32>
    %c0_3 = arith.constant 0 : index
    %c0_4 = arith.constant 0 : index
    %5 = vector.load %arg3[%c0_3, %c0_4] : memref<1x32xf32, #tpu.memory_space<vmem>>, vector<1x32xf32>
    %6 = vector.broadcast %5 : vector<1x32xf32> to vector<16x32xf32>
    %7 = arith.addf %4, %6 : vector<16x32xf32>
    %c0_5 = arith.constant 0 : index
    %c0_6 = arith.constant 0 : index
    %8 = vector.load %arg4[%c0_5, %c0_6] : memref<16x32xf32, #tpu.memory_space<vmem>>, vector<16x32xf32>
    tpu.vector_store %arg4[%c0_5, %c0_6], %7 {strides = array<i32>} : memref<16x32xf32, #tpu.memory_space<vmem>>, vector<16x32xf32>,
    return
  }
  func.func @transform_0(%arg0: i32) -> (i32, i32) {
    %c0_i32 = arith.constant 0 : i32
    %c0_i32_0 = arith.constant 0 : i32
    return %arg0, %c0_i32 : i32, i32
  }
  func.func @transform_1(%arg0: i32) -> (i32, i32) {
    %c0_i32 = arith.constant 0 : i32
    %c0_i32_0 = arith.constant 0 : i32
    %c0_i32_1 = arith.constant 0 : i32
    return %c0_i32, %c0_i32_0 : i32, i32
  }
  func.func @transform_2(%arg0: i32) -> (i32, i32) {
    %c0_i32 = arith.constant 0 : i32
    %c0_i32_0 = arith.constant 0 : i32
    %c0_i32_1 = arith.constant 0 : i32
    return %c0_i32, %c0_i32_0 : i32, i32
  }
  func.func @transform_3(%arg0: i32) -> (i32, i32) {
    %c0_i32 = arith.constant 0 : i32
    %c0_i32_0 = arith.constant 0 : i32
    return %arg0, %c0_i32 : i32, i32
  }
}

</mosaic_0001>

<bundles_post_ra>
// kernel: tpu_custom_call.1
= control target key start
LH: loop header
LB: loop body
LE: loop exit
PB: predicated region body
PF: predicated region fallthrough
CT: control target
= control target key end

     0   :  { %8 = vsyncpa [#allocation3], 0  ;;  %s287_s0 = inlined_call_operand.hbm [shape: f32[16,16], index: 0, kind: input, shape index: {}]   ;;  %s288_s1 = inlined_call_operand.hbm [shape: f32[16,32], index: 1, kind: input, shape index: {}]   ;;  %s289_s2 = inlined_call_operand.vmem [shape: f32[1,32], index: 2, kind: input, shape index: {}]   ;;  %s290_s3 = inlined_call_operand.hbm [shape: f32[16,32], index: 3, kind: output, shape index: {}]  }
   0x1   :  { %9 = vsyncpa [#allocation6], 0 }
   0x2   :  { %10 = vsyncpa [#allocation4], 0  ;;  %s212_s12 = smov [#allocation2]   ;;  %s140_s16 = scalar_lea.hbm %s287_s0, 256 }
   0x3   :  { %s16_s13 = sshll.u32 %s212_s12, 4  ;;  %p141_p0 = scmp.ne.s32.totalorder %s287_s0, %s140_s16  ;;  %s17_s13 = int_to_ptr.vmem [resolvable:$true] %s16_s13 }
   0x4   :  { %p144_p1 = scmp.lt.u32.totalorder %s140_s16, %s287_s0 }
   0x6   :  { %p146_p2 = pnand %p144_p1, %p141_p0 }
   0x8   :  { %149 = shalt.err (!%p146_p2)
}
   0x9   :  { %s150_s21 = scalar_lea.vmem %s17_s13, 256  ;;  %p155_p4 = scmp.lt.s32.totalorder %s17_s13, %s17_s13 }
   0xa   :  { %p151_p3 = scmp.ne.s32.totalorder %s17_s13, %s150_s21  ;;  %p156_p5 = scmp.lt.s32.totalorder %s150_s21, %s150_s21 }
   0xc   :  { %p157_p6 = por %p156_p5, %p155_p4 }
   0xe   :  { %p158_p7 = pnand %p157_p6, %p151_p3 }
  0x10   :  { %161 = shalt.err (!%p158_p7)
}
  0x11   :  { %s213_s22 = smov 128   ;;  %s214_s23 = smov 8  }
  0x12   :  { %22 = dma.hbm_to_vmem [thread:$0]  %s287_s0, 256, %s17_s13, [#allocation3], %s213_s22, %s213_s22, %s214_s23  }
  0x13   :  { %s215_s26 = smov [#allocation5]   ;;  %s162_s30 = scalar_lea.hbm %s288_s1, 256 }
  0x14   :  { %s28_s27 = sshll.u32 %s215_s26, 4  ;;  %p163_p8 = scmp.ne.s32.totalorder %s288_s1, %s162_s30  ;;  %s29_s27 = int_to_ptr.vmem [resolvable:$true] %s28_s27 }
  0x15   :  { %p166_p9 = scmp.lt.u32.totalorder %s162_s30, %s288_s1 }
  0x17   :  { %p168_p10 = pnand %p166_p9, %p163_p8 }
  0x19   :  { %171 = shalt.err (!%p168_p10)
}
  0x1a   :  { %s172_s8 = scalar_lea.vmem %s29_s27, 256  ;;  %p177_p12 = scmp.lt.s32.totalorder %s29_s27, %s29_s27 }
  0x1b   :  { %p173_p11 = scmp.ne.s32.totalorder %s29_s27, %s172_s8  ;;  %p178_p13 = scmp.lt.s32.totalorder %s172_s8, %s172_s8 }
  0x1d   :  { %p179_p0 = por %p178_p13, %p177_p12 }
  0x1f   :  { %p180_p1 = pnand %p179_p0, %p173_p11 }
  0x21   :  { %183 = shalt.err (!%p180_p1)
}
  0x22   :  { %34 = dma.hbm_to_vmem [thread:$0]  %s288_s1, 256, %s29_s27, [#allocation6], %s213_s22, %s213_s22, %s214_s23  }
  0x23   :  { %206 = dma.done.wait [#allocation3], 256  }
  0x24   :  { %207 = vsyncadd [#allocation3], 4294967040 }
  0x25   :  { %208 = dma.done.wait [#allocation6], 256  }
  0x26   :  { %209 = vsyncadd [#allocation6], 4294967040  ;;  %v216_v0 = vmov 0.0   ;;  %vm217_vm0 = vmmov 0   ;;  %v47_v1 = vld [vmem:[#allocation5] sm:$0xff]  ;;  %v48_v2 = vld [vmem:[#allocation5 + $0x8] sm:$0xff] }
  0x27   :  { %127 = vmatprep.subr.bf16.mxu0 %v216_v0  ;;  %129 = vmatprep.mubr.msk.bf16.mxu0 %vm217_vm0, %v216_v0  ;;  %v44_v3 = vld [vmem:[#allocation2] sm:$0xff]  ;;  %v49_v4 = vpack.c.bf16 %v48_v2, %v47_v1  ;;  %v45_v5 = vld [vmem:[#allocation2 + $0x8] sm:$0xff]  ;;  %vm57_vm1 = vcmask 130048   ;;  %vm102_vm2 = vcmask 261120   ;;  %s218_s1 = smov [#allocation7]  }
  0x28   :  { %v46_v6 = vpack.c.bf16 %v45_v5, %v44_v3  ;;  %v123_v7 = vld [vmem:[%s289_s2] ss:$0 sm:$0xff]  ;;  %s110_s12 = sshll.u32 %s218_s1, 4  ;;  %s111_s12 = int_to_ptr.vmem [resolvable:$true] %s110_s12 }
  0x29   :  { %128 = vmatpush3.bf16.msra.mxu0 %v49_v4  ;;  %s184_s13 = scalar_lea.vmem %s111_s12, 256  ;;  %p189_p3 = scmp.lt.s32.totalorder %s111_s12, %s111_s12 }
  0x2a   :  { %p185_p2 = scmp.ne.s32.totalorder %s111_s12, %s184_s13  ;;  %p190_p4 = scmp.lt.s32.totalorder %s184_s13, %s184_s13 }
  0x2c   :  { %130 = vmatmul.mubr.msk.bf16.vlgmr.msra.gmra.mrb[0].mxu0 %vm57_vm1, %v46_v6  ;;  %p191_p5 = por %p190_p4, %p189_p3 }
  0x2e   :  { %p192_p6 = pnand %p191_p5, %p185_p2 }
  0xff   :  { %v95_v8 = vpop.f32.mrb[0].mxu0 }
 0x100   :  { %v96_v9 = vadd.f32 %v123_v7, %v95_v8  ;;  %v131_v10 = vpop.f32.mrb[1].mxu0 }
 0x101   :  { %v98_v11 = vpop.f32.mrb[2].mxu0 }
 0x102   :  { %v99_v12 = vadd.f32 %v123_v7, %v98_v11  ;;  %v132_v13 = vpop.f32.mrb[3].mxu0  ;;  %103 = vst.msk [vmem:[#allocation7] sm:$0xff] %vm102_vm2, %v96_v9 }
 0x104   :  { %104 = vst.msk [vmem:[#allocation7 + $0x8] sm:$0xff] %vm102_vm2, %v99_v12 }
 0x105   :  { %195 = shalt.err (!%p192_p6)
}
 0x106   :  { %s196_s15 = scalar_lea.hbm %s290_s3, 256 }
 0x107   :  { %p197_p7 = scmp.ne.s32.totalorder %s290_s3, %s196_s15  ;;  %p200_p8 = scmp.lt.u32.totalorder %s196_s15, %s290_s3 }
 0x109   :  { %p202_p9 = pnand %p200_p8, %p197_p7 }
 0x10b   :  { %205 = shalt.err (!%p202_p9)
}
 0x10c   :  { %116 = dma.vmem_to_hbm [thread:$0]  %s111_s12, 256, %s290_s3, [#allocation4], %s213_s22, %s213_s22, %s214_s23  }
 0x10d   :  { %210 = dma.done.wait [#allocation4], 256  }
 0x10e   :  { %211 = vsyncadd [#allocation4], 4294967040 }
 0x10f   :  { %120 = vsyncpa [#allocation3], 1 }
 0x110   :  { %121 = vsyncpa [#allocation6], 1 }
 0x111   :  { %122 = vsyncpa [#allocation4], 1 }

</bundles_post_ra>
